<compile_context>
chip_gen: v6e
topology: v6e:2x2x1
jax: 0.10.0
libtpu: 0.0.40
codegen_flags: <defaults>
</compile_context>

<pallas_src>
import functools
import math

import jax
import jax.numpy as jnp
from jax.experimental import pallas as pl
from jax.experimental.pallas import tpu as pltpu


def _round_up(x, m):
    return ((x + m - 1) // m) * m


def arc_margin_kernel(x_ref, w_ref, label_ref, out_ref, *,
                      s, cos_m, sin_m, th, mm, easy_margin, tile_c):
    eps = 1e-12
    x = x_ref[...]                       # (B, D) f32, resident across the grid
    w = w_ref[...]                       # (TILE_C, D) f32, streamed slab of W

    # F.normalize(dim=-1, eps):  v / max(||v||, eps) == v * rsqrt(max(||v||^2, eps^2))
    inv_x = jax.lax.rsqrt(
        jnp.maximum(jnp.sum(x * x, axis=-1, keepdims=True), eps * eps))   # (B, 1)
    inv_w = jax.lax.rsqrt(
        jnp.maximum(jnp.sum(w * w, axis=-1, keepdims=True), eps * eps))   # (TILE_C, 1)

    # cosine = x_n @ w_n.T on the MXU: bf16 operands, f32 accumulate, contract on the
    # shared last dim (no explicit transpose of the streamed W slab).
    raw = jax.lax.dot_general(
        x.astype(jnp.bfloat16),
        (w * inv_w).astype(jnp.bfloat16),
        dimension_numbers=(((1,), (1,)), ((), ())),
        preferred_element_type=jnp.float32)                               # (B, TILE_C)
    cosine = raw * inv_x

    # sine = sqrt(clamp(1 - cos^2, 0, 1)); keep only the lower clamp (bf16 operands
    # can push |cosine| marginally above 1), the upper clamp is redundant.
    sine = jnp.sqrt(jnp.maximum(1.0 - cosine * cosine, 0.0))

    phi = cosine * cos_m - sine * sin_m
    if easy_margin:
        phi = jnp.where(cosine > 0.0, phi, cosine)
    else:
        phi = jnp.where(cosine > th, phi, cosine - mm)

    # one_hot(label) blend as a single select; labels are shifted by this tile's base
    # class index so the margin lands on the right column in every tile.
    tile_base = pl.program_id(0) * tile_c
    local_label = label_ref[...] - tile_base                              # (B, 1) int32
    col_ids = jax.lax.broadcasted_iota(jnp.int32, cosine.shape, 1)        # (B, TILE_C)
    out = jnp.where(col_ids == local_label, phi, cosine) * s
    out_ref[...] = out.astype(out_ref.dtype)


def arc_margin_product(x, weight, label, *, s=64.0, m=0.5, easy_margin=False,
                       max_tile_c=2048, _force_tile_c=None):
    """x: (B, in_features) f32, weight: (out_features, in_features) f32,
    label: (B,) int.  Returns (B, out_features) float16 logits (torch .half())."""
    B, D = x.shape
    C, D2 = weight.shape
    assert D == D2, "in_features mismatch"

    x = x.astype(jnp.float32)
    weight = weight.astype(jnp.float32)
    label2d = label.astype(jnp.int32).reshape(B, 1)

    # Per-generation VMEM budget (v5e/v6e: 128 MiB physical, v7x: 64 MiB per core).
    try:
        vmem_cap = int(pltpu.get_tpu_info().vmem_capacity_bytes)
    except Exception:
        vmem_cap = 64 * 1024 * 1024
    budget = max(8 * 1024 * 1024, vmem_cap // 3)

    # Conservative VMEM estimate for a candidate class tile (lane/sublane padding slack).
    x_bytes = max(B, 8) * max(D, 128) * 4
    lbl_bytes = max(B, 8) * 128 * 4
    def stream_bytes(tile):
        return (2 * tile * max(D, 128) * 4       # double-buffered W slab (f32)
                + 2 * max(B, 8) * tile * 4       # double-buffered output slab (f32)
                + x_bytes + lbl_bytes)           # resident x + labels

    if _force_tile_c is not None:
        tile_c = int(_force_tile_c)
    elif stream_bytes(_round_up(C, 128)) <= budget or C <= 128:
        # Everything fits: a single full-dim block, no tiling, no alignment constraints.
        tile_c = C
    else:
        # Largest 128-multiple class tile whose pipelined buffers fit the VMEM budget.
        tile_c = 128
        cap = max(128, min(_round_up(max_tile_c, 128), _round_up(C, 128)))
        for cand in range(cap, 127, -128):
            if stream_bytes(cand) <= budget:
                tile_c = cand
                break
    grid = (pl.cdiv(C, tile_c),)

    vmem_need = stream_bytes(tile_c)
    vmem_limit = int(min(max(2 * vmem_need, 16 * 1024 * 1024),
                         max(vmem_cap - 2 * 1024 * 1024, 16 * 1024 * 1024)))

    kernel = functools.partial(
        arc_margin_kernel,
        s=float(s),
        cos_m=math.cos(m),
        sin_m=math.sin(m),
        th=math.cos(math.pi - m),
        mm=math.sin(math.pi - m) * m,
        easy_margin=easy_margin,
        tile_c=tile_c,
    )

    # TODO(synk): tile the batch dim as a second grid axis for very large B.
    out_f32 = pl.pallas_call(
        kernel,
        out_shape=jax.ShapeDtypeStruct((B, C), jnp.float32),
        grid=grid,
        in_specs=[
            pl.BlockSpec((B, D), lambda j: (0, 0)),        # x: resident, fetched once
            pl.BlockSpec((tile_c, D), lambda j: (j, 0)),   # W: streamed per class tile
            pl.BlockSpec((B, 1), lambda j: (0, 0)),        # labels: resident
        ],
        out_specs=pl.BlockSpec((B, tile_c), lambda j: (0, j)),
        compiler_params=pltpu.CompilerParams(
            dimension_semantics=("parallel",),
            vmem_limit_bytes=vmem_limit,
        ),
    )(x, weight, label2d)

    # `.half()` of the torch reference.
    # TODO(synk): emit float16 directly from the kernel (halves the logits writeback)
    # once fp16 VMEM stores are uniformly supported across TPU generations.
    return out_f32.astype(jnp.float16)


def xavier_uniform(key, out_features, in_features):
    # nn.init.xavier_uniform_: U(-a, a), a = sqrt(6 / (fan_in + fan_out))
    bound = math.sqrt(6.0 / (in_features + out_features))
    return jax.random.uniform(
        key, (out_features, in_features), jnp.float32, minval=-bound, maxval=bound)


def _reference(x, weight, label, *, s, m, easy_margin):
    """Pure-JAX f32 mirror of the torch forward (for a sanity check)."""
    eps = 1e-12
    x_n = x / jnp.maximum(jnp.linalg.norm(x, axis=-1, keepdims=True), eps)
    w_n = weight / jnp.maximum(jnp.linalg.norm(weight, axis=-1, keepdims=True), eps)
    cosine = x_n @ w_n.T
    sine = jnp.sqrt(jnp.clip(1.0 - cosine * cosine, 0.0, 1.0))
    cos_m, sin_m = math.cos(m), math.sin(m)
    th, mm = math.cos(math.pi - m), math.sin(math.pi - m) * m
    phi = cosine * cos_m - sine * sin_m
    phi = (jnp.where(cosine > 0.0, phi, cosine) if easy_margin
           else jnp.where(cosine > th, phi, cosine - mm))
    one_hot = jax.nn.one_hot(label, weight.shape[0], dtype=cosine.dtype)
    return (one_hot * phi + (1.0 - one_hot) * cosine) * s


if __name__ == "__main__":
    key = jax.random.PRNGKey(0)
    kx, kw, kl, kx2, kw2, kl2 = jax.random.split(key, 6)

    # 1) Small problem -> single full-dim block path (no tiling, no padding).
    B, in_features, out_features = 8, 32, 16
    x = jax.random.normal(kx, (B, in_features), jnp.float32)
    weight = xavier_uniform(kw, out_features, in_features)
    label = jax.random.randint(kl, (B,), 0, out_features, jnp.int32)

    out = arc_margin_product(x, weight, label, s=64.0, m=0.5, easy_margin=False)
    out = jax.block_until_ready(out)
    assert out.shape == (B, out_features) and out.dtype == jnp.float16
    ref = _reference(x, weight, label, s=64.0, m=0.5, easy_margin=False)
    err = float(jnp.max(jnp.abs(out.astype(jnp.float32) - ref)))
    assert err < 1.0, f"single-block path: max abs error vs reference too large: {err}"

    # 2) Streamed path: class dim tiled over a 4-step grid (forced small tile).
    B2, in2, out2_feats = 8, 128, 512
    x2 = jax.random.normal(kx2, (B2, in2), jnp.float32)
    weight2 = xavier_uniform(kw2, out2_feats, in2)
    label2 = jax.random.randint(kl2, (B2,), 0, out2_feats, jnp.int32)

    out2 = arc_margin_product(x2, weight2, label2, s=64.0, m=0.5, easy_margin=True,
                              _force_tile_c=128)
    out2 = jax.block_until_ready(out2)
    assert out2.shape == (B2, out2_feats) and out2.dtype == jnp.float16
    ref2 = _reference(x2, weight2, label2, s=64.0, m=0.5, easy_margin=True)
    err2 = float(jnp.max(jnp.abs(out2.astype(jnp.float32) - ref2)))
    assert err2 < 1.0, f"streamed path: max abs error vs reference too large: {err2}"

    print("KERNEL_OK")
</pallas_src>

<mosaic_0001>
module attributes {stable_mosaic.version = 11 : i64} {
  func.func @arc_margin_kernel(%arg0: i32, %arg1: memref<8x32xf32, #tpu.memory_space<vmem>>, %arg2: memref<16x32xf32, #tpu.memory_space<vmem>>, %arg3: memref<8x1xi32, #tpu.memory_space<vmem>>, %arg4: memref<8x16xf32, #tpu.memory_space<vmem>>) attributes {dimension_semantics = [#tpu.dimension_semantics<parallel>], iteration_bounds = array<i64: 1>, scalar_prefetch = 0 : i64, scratch_operands = 0 : i64, tpu.core_type = #tpu.core_type<tc>, window_params = [{pipeline_mode = #tpu.pipeline_mode<synchronous>, transform_indices = @transform_0, window_bounds = array<i64: 8, 32>}, {transform_indices = @transform_1, window_bounds = array<i64: 16, 32>}, {pipeline_mode = #tpu.pipeline_mode<synchronous>, transform_indices = @transform_2, window_bounds = array<i64: 8, 1>}, {transform_indices = @transform_3, window_bounds = array<i64: 8, 16>}]} {
    %c0 = arith.constant 0 : index
    %c0_0 = arith.constant 0 : index
    %0 = vector.load %arg1[%c0, %c0_0] : memref<8x32xf32, #tpu.memory_space<vmem>>, vector<8x32xf32>
    %c0_1 = arith.constant 0 : index
    %c0_2 = arith.constant 0 : index
    %1 = vector.load %arg2[%c0_1, %c0_2] : memref<16x32xf32, #tpu.memory_space<vmem>>, vector<16x32xf32>
    %2 = arith.mulf %0, %0 : vector<8x32xf32>
    %cst = arith.constant dense<0.000000e+00> : vector<8xf32>
    %3 = vector.multi_reduction <add>, %2, %cst [1] : vector<8x32xf32> to vector<8xf32>
    %4 = vector.shape_cast %3 : vector<8xf32> to vector<8x1xf32>
    %cst_3 = arith.constant 1.000000e-24 : f32
    %5 = vector.broadcast %cst_3 : f32 to vector<8x1xf32>
    %6 = arith.maximumf %4, %5 : vector<8x1xf32>
    %7 = math.rsqrt %6 : vector<8x1xf32>
    %8 = arith.mulf %1, %1 : vector<16x32xf32>
    %cst_4 = arith.constant dense<0.000000e+00> : vector<16xf32>
    %9 = vector.multi_reduction <add>, %8, %cst_4 [1] : vector<16x32xf32> to vector<16xf32>
    %10 = vector.shape_cast %9 : vector<16xf32> to vector<16x1xf32>
    %cst_5 = arith.constant 1.000000e-24 : f32
    %11 = vector.broadcast %cst_5 : f32 to vector<16x1xf32>
    %12 = arith.maximumf %10, %11 : vector<16x1xf32>
    %13 = math.rsqrt %12 : vector<16x1xf32>
    %14 = arith.truncf %0 : vector<8x32xf32> to vector<8x32xbf16>
    %15 = vector.broadcast %13 : vector<16x1xf32> to vector<16x32xf32>
    %16 = arith.mulf %1, %15 : vector<16x32xf32>
    %17 = arith.truncf %16 : vector<16x32xf32> to vector<16x32xbf16>
    %cst_6 = arith.constant dense<0.000000e+00> : vector<8x16xf32>
    %18 = tpu.matmul %14, %17, %cst_6 {dimension_numbers = #tpu.dot_dimension_numbers<[1], [1], [0], [0], [0, 0, 1, 0], [], []>} : vector<8x32xbf16>, vector<16x32xbf16>, vector<8x16xf32> -> vector<8x16xf32>
    %19 = vector.broadcast %7 : vector<8x1xf32> to vector<8x16xf32>
    %20 = arith.mulf %18, %19 : vector<8x16xf32>
    %21 = arith.mulf %20, %20 : vector<8x16xf32>
    %cst_7 = arith.constant 1.000000e+00 : f32
    %22 = vector.broadcast %cst_7 : f32 to vector<8x16xf32>
    %23 = arith.subf %22, %21 : vector<8x16xf32>
    %cst_8 = arith.constant 0.000000e+00 : f32
    %24 = vector.broadcast %cst_8 : f32 to vector<8x16xf32>
    %25 = arith.maximumf %23, %24 : vector<8x16xf32>
    %26 = math.sqrt %25 : vector<8x16xf32>
    %cst_9 = arith.constant 0.87758255 : f32
    %27 = vector.broadcast %cst_9 : f32 to vector<8x16xf32>
    %28 = arith.mulf %20, %27 : vector<8x16xf32>
    %cst_10 = arith.constant 0.47942555 : f32
    %29 = vector.broadcast %cst_10 : f32 to vector<8x16xf32>
    %30 = arith.mulf %26, %29 : vector<8x16xf32>
    %31 = arith.subf %28, %30 : vector<8x16xf32>
    %cst_11 = arith.constant -0.87758255 : f32
    %32 = vector.broadcast %cst_11 : f32 to vector<8x16xf32>
    %33 = arith.cmpf ogt, %20, %32 : vector<8x16xf32>
    %cst_12 = arith.constant 0.239712775 : f32
    %34 = vector.broadcast %cst_12 : f32 to vector<8x16xf32>
    %35 = arith.subf %20, %34 : vector<8x16xf32>
    %36 = arith.select %33, %31, %35 : vector<8x16xi1>, vector<8x16xf32>
    %c16_i32 = arith.constant 16 : i32
    %37 = arith.muli %arg0, %c16_i32 : i32
    %c0_13 = arith.constant 0 : index
    %c0_14 = arith.constant 0 : index
    %38 = vector.load %arg3[%c0_13, %c0_14] : memref<8x1xi32, #tpu.memory_space<vmem>>, vector<8x1xi32>
    %39 = vector.broadcast %37 : i32 to vector<8x1xi32>
    %40 = arith.subi %38, %39 : vector<8x1xi32>
    %41 = tpu.iota {dimensions = array<i32: 1>} : vector<8x16xi32>
    %42 = vector.broadcast %40 : vector<8x1xi32> to vector<8x16xi32>
    %43 = arith.cmpi eq, %41, %42 : vector<8x16xi32>
    %44 = arith.select %43, %36, %20 : vector<8x16xi1>, vector<8x16xf32>
    %cst_15 = arith.constant 6.400000e+01 : f32
    %45 = vector.broadcast %cst_15 : f32 to vector<8x16xf32>
    %46 = arith.mulf %44, %45 : vector<8x16xf32>
    %c0_16 = arith.constant 0 : index
    %c0_17 = arith.constant 0 : index
    %47 = vector.load %arg4[%c0_16, %c0_17] : memref<8x16xf32, #tpu.memory_space<vmem>>, vector<8x16xf32>
    tpu.vector_store %arg4[%c0_16, %c0_17], %46 {strides = array<i32>} : memref<8x16xf32, #tpu.memory_space<vmem>>, vector<8x16xf32>,
    return
  }
  func.func @transform_0(%arg0: i32) -> (i32, i32) {
    %c0_i32 = arith.constant 0 : i32
    %c0_i32_0 = arith.constant 0 : i32
    %c0_i32_1 = arith.constant 0 : i32
    return %c0_i32, %c0_i32_0 : i32, i32
  }
  func.func @transform_1(%arg0: i32) -> (i32, i32) {
    %c0_i32 = arith.constant 0 : i32
    %c0_i32_0 = arith.constant 0 : i32
    return %arg0, %c0_i32 : i32, i32
  }
  func.func @transform_2(%arg0: i32) -> (i32, i32) {
    %c0_i32 = arith.constant 0 : i32
    %c0_i32_0 = arith.constant 0 : i32
    %c0_i32_1 = arith.constant 0 : i32
    return %c0_i32, %c0_i32_0 : i32, i32
  }
  func.func @transform_3(%arg0: i32) -> (i32, i32) {
    %c0_i32 = arith.constant 0 : i32
    %c0_i32_0 = arith.constant 0 : i32
    return %c0_i32, %arg0 : i32, i32
  }
}

</mosaic_0001>

<bundles_post_ra>
// kernel: tpu_custom_call.1
= control target key start
LH: loop header
LB: loop body
LE: loop exit
PB: predicated region body
PF: predicated region fallthrough
CT: control target
= control target key end

     0   :  { %8 = vsyncpa [#allocation3], 0  ;;  %s263_s0 = inlined_call_operand.vmem [shape: f32[8,32], index: 0, kind: input, shape index: {}]   ;;  %s264_s1 = inlined_call_operand.hbm [shape: f32[16,32], index: 1, kind: input, shape index: {}]   ;;  %s265_s2 = inlined_call_operand.vmem [shape: s32[8,1], index: 2, kind: input, shape index: {}]   ;;  %s266_s3 = inlined_call_operand.hbm [shape: f32[8,16], index: 3, kind: output, shape index: {}]  }
   0x1   :  { %9 = vsyncpa [#allocation4], 0  ;;  %s219_s12 = smov [#allocation2]  }
   0x2   :  { %s17_s13 = sshll.u32 %s219_s12, 4  ;;  %s18_s13 = int_to_ptr.vmem [resolvable:$true] %s17_s13 }
   0x3   :  { %s183_s14 = scalar_lea.vmem %s18_s13, 256  ;;  %p188_p1 = scmp.lt.s32.totalorder %s18_s13, %s18_s13 }
   0x4   :  { %p184_p0 = scmp.ne.s32.totalorder %s18_s13, %s183_s14  ;;  %p189_p2 = scmp.lt.s32.totalorder %s183_s14, %s183_s14 }
   0x6   :  { %p190_p3 = por %p189_p2, %p188_p1 }
   0x8   :  { %p191_p4 = pnand %p190_p3, %p184_p0 }
   0xa   :  { %194 = shalt.err (!%p191_p4)
}
   0xb   :  { %s220_s15 = smov 128   ;;  %s221_s16 = smov 8  }
   0xc   :  { %23 = dma.hbm_to_vmem [thread:$0]  %s264_s1, 256, %s18_s13, [#allocation3], %s220_s15, %s220_s15, %s221_s16  }
   0xd   :  { %215 = dma.done.wait [#allocation3], 256  }
   0xe   :  { %216 = vsyncadd [#allocation3], 4294967040  ;;  %v31_v0 = vld [vmem:[#allocation2] sm:$0xff]  ;;  %vm34_vm0 = vcmask 261120   ;;  %v32_v1 = vld [vmem:[#allocation2 + $0x8] sm:$0xff]  ;;  %v222_v6 = vmov 0.0   ;;  %v123_v34 = vlaneseq }
   0xf   :  { %v40_v2 = vmul.f32 %v31_v0, %v31_v0  ;;  %v41_v3 = vmul.f32 %v32_v1, %v32_v1  ;;  %152 = vmatprep.subr.bf16.mxu0 %v222_v6  ;;  %vm223_vm1 = vmmov 0   ;;  %v30_v7 = vld [vmem:[%s263_s0] sm:$0xff]  ;;  %v224_v9 = vmov 0   ;;  %s225_s0 = smov [#allocation5]  }
  0x10   :  { %154 = vmatprep.mubr.msk.bf16.mxu0 %vm223_vm1, %v222_v6  ;;  %v33_v8 = vmul.f32 %v30_v7, %v30_v7  ;;  %165 = vset.pattern.permute.xlu1 %v224_v9  ;;  %v120_v11 = vld [vmem:[%s265_s2] sm:$0xff]  ;;  %v52_v22 = vpack.c.bf16 %v30_v7, %v30_v7  ;;  %v124_v39 = vand.u32 127, %v123_v34  ;;  %s139_s2 = sshll.u32 %s225_s0, 4  ;;  %vm131_vm6 = vcmask 130048   ;;  %s140_s2 = int_to_ptr.vmem [resolvable:$true] %s139_s2 }
  0x11   :  { %v42_v4 = vsel %vm34_vm0, %v40_v2, 0.0  ;;  %v45_v5 = vsel %vm34_vm0, %v41_v3, 0.0  ;;  %166 = vset.pattern.permute.xlu0 %v224_v9  ;;  %s195_s22 = scalar_lea.vmem %s140_s2, 128  ;;  %p200_p6 = scmp.lt.s32.totalorder %s140_s2, %s140_s2 }
  0x12   :  { %43 = vadd.xlane.f32.xlu0 %v42_v4  ;;  %v35_v10 = vsel %vm34_vm0, %v33_v8, 0.0  ;;  %p196_p5 = scmp.ne.s32.totalorder %s140_s2, %s195_s22  ;;  %p201_p7 = scmp.lt.s32.totalorder %s195_s22, %s195_s22 }
  0x13   :  { %36 = vadd.xlane.f32.xlu1 %v35_v10 }
  0x14   :  { %p202_p8 = por %p201_p7, %p200_p6 }
  0x16   :  { %46 = vadd.xlane.f32.xlu0 %v45_v5  ;;  %p203_p9 = pnand %p202_p8, %p196_p5 }
  0x24   :  { %126 = vperm.xlu1 %165, %v120_v11  }
  0x9b   :  { %v44_v12 = vpop.xlane.xlu0 %43 }
  0x9c   :  { %v48_v13 = vmax.f32 %v44_v12, 1e-24  ;;  %v37_v23 = vpop.xlane.xlu1 %36 }
  0x9d   :  { %v38_v24 = vmax.f32 %v37_v23, 1e-24 }
  0x9e   :  { %167 = vrsqrt.f32 %v48_v13 }
  0x9f   :  { %v47_v14 = vpop.xlane.xlu0 %46 }
  0xa0   :  { %v49_v15 = vmax.f32 %v47_v14, 1e-24  ;;  %v127_v41 = vpop.permute.xlu1 %126 }
  0xa1   :  { %vm128_vm4 = vcmp.eq.s32.totalorder %v124_v39, %v127_v41 }
  0xa2   :  { %169 = vrsqrt.f32 %v49_v15 }
  0xa3   :  { %171 = vrsqrt.f32 %v38_v24 }
  0xab   :  { %v168_v16 = vpop.eup %167 }
  0xac   :  { %v53_v18 = vmul.f32 %v168_v16, %v31_v0 }
  0xaf   :  { %v170_v17 = vpop.eup %169 }
  0xb0   :  { %v54_v19 = vmul.f32 %v170_v17, %v32_v1  ;;  %v172_v25 = vpop.eup %171 }
  0xb2   :  { %v55_v20 = vpack.c.bf16 %v54_v19, %v53_v18 }
  0xb4   :  { %v60_v21 = vsel %vm34_vm0, %v55_v20, 0 }
  0xb5   :  { %153 = vmatpush3.bf16.xpose.msra.mxu0 %v60_v21 }
  0xbc   :  { %155 = vmatmul.mubr.msk.bf16.vlgmr.msra.gmra.mxu0 %vm34_vm0, %v52_v22 }
 0x17c   :  { %v96_v26 = vpop.f32.mrf.mxu0 }
 0x17d   :  { %v102_v27 = vmul.f32 %v172_v25, %v96_v26 }
 0x17e   :  { %v156_v28 = vpop.f32.mrf.mxu0 }
 0x17f   :  { %v103_v29 = vmul.f32 %v102_v27, %v102_v27  ;;  %v113_v42 = vmul.f32 0.87758255, %v102_v27  ;;  %v149_v45 = vadd.f32 -0.23971277, %v102_v27  ;;  %vm116_vm5 = vcmp.gt.f32.partialorder %v102_v27, -0.87758255 }
 0x180   :  { %v99_v30 = vpop.f32.mrf.mxu0 }
 0x181   :  { %v104_v31 = vsub.f32 1.0, %v103_v29 }
 0x182   :  { %v157_v32 = vpop.f32.mrf.mxu0 }
 0x183   :  { %v105_v33 = vmax.f32 %v104_v31, 0.0 }
 0x185   :  { %173 = vrsqrt.f32 %v105_v33  ;;  %vm108_vm2 = vcmp.eq.f32.partialorder %v105_v33, inf  ;;  %v111_v37 = vand.u32 2147483648, %v105_v33  ;;  %vm110_vm3 = vcmp.eq.f32.partialorder %v105_v33, 0.0 }
 0x192   :  { %v174_v35 = vpop.eup %173 }
 0x193   :  { %v107_v36 = vmul.f32 %v174_v35, %v105_v33 }
 0x195   :  { %v109_v38 = vsel %vm108_vm2, %v105_v33, %v107_v36 }
 0x196   :  { %v112_v40 = vsel %vm110_vm3, %v111_v37, %v109_v38 }
 0x197   :  { %v114_v43 = vmul.f32 0.47942555, %v112_v40 }
 0x199   :  { %v115_v44 = vsub.f32 %v113_v42, %v114_v43 }
 0x19b   :  { %v118_v46 = vsel %vm116_vm5, %v115_v44, %v149_v45 }
 0x19c   :  { %v129_v47 = vsel %vm128_vm4, %v118_v46, %v102_v27 }
 0x19d   :  { %v130_v48 = vmul.f32 64.0, %v129_v47 }
 0x19f   :  { %132 = vst.msk [vmem:[#allocation5] sm:$0xff] %vm131_vm6, %v130_v48 }
 0x1a0   :  { %206 = shalt.err (!%p203_p9)
}
 0x1a1   :  { %142 = dma.vmem_to_hbm [thread:$0]  %s140_s2, 128, %s266_s3, [#allocation4]  }
 0x1a2   :  { %217 = dma.done.wait [#allocation4], 128  }
 0x1a3   :  { %218 = vsyncadd [#allocation4], 4294967168 }
 0x1a4   :  { %146 = vsyncpa [#allocation3], 1 }
 0x1a5   :  { %147 = vsyncpa [#allocation4], 1 }

</bundles_post_ra>
